<compile_context>
chip_gen: v5e
topology: v5e:2x2
jax: 0.10.0
libtpu: 0.0.40
codegen_flags: <defaults>
</compile_context>

<pallas_src>
import math
from functools import partial

import jax
import jax.numpy as jnp
from jax import lax
from jax.experimental import pallas as pl
from jax.experimental.pallas import tpu as pltpu

_MIB = 1 << 20


def _round_up(n, m):
    return ((n + m - 1) // m) * m


def _pick_tile(total, desired):
    """Largest divisor of `total` that is <= `desired` and sublane-aligned
    (multiple of 8), falling back to the full extent."""
    if total <= desired:
        return total
    for t in range(min(desired, total), 0, -1):
        if total % t == 0 and t % 8 == 0:
            return t
    return total


def _vmem_limit_bytes(footprint):
    # Request only what the kernel needs plus headroom: raising above the
    # scoped default helps large tiles on v5e/v6e while staying well under the
    # 64 MiB physical per-TC VMEM on v7x.  Never below 32 MiB (the v6e/v7x
    # scoped default), never below the footprint itself.
    return int(max(32 * _MIB,
                   min(footprint * 3 // 2, 48 * _MIB),
                   footprint + 2 * _MIB))


# ----------------------------------------------------------------------------
# Kernel 1: fused Q/K/V projection  (x @ [Wq*s | Wk | Wv] + [bq*s | bk | bv])
# One (ts, D) x (D, 3D) bf16 MXU matmul per sequence tile, f32 accumulation.
# ----------------------------------------------------------------------------
def _qkv_proj_kernel(x_ref, w_ref, b_ref, q_ref, k_ref, v_ref):
    D = q_ref.shape[-1]
    x = x_ref[0]                                           # (ts, D)  bf16
    qkv = jnp.dot(x, w_ref[...],                           # (ts, 3D) f32 acc
                  preferred_element_type=jnp.float32) + b_ref[...]
    q_ref[0] = qkv[:, :D].astype(q_ref.dtype)
    k_ref[0] = qkv[:, D:2 * D].astype(k_ref.dtype)
    v_ref[0] = qkv[:, 2 * D:].astype(v_ref.dtype)


# ----------------------------------------------------------------------------
# Kernel 2: flash-style attention with online softmax.
# Grid (B, q_tiles, kv_tiles); heads handled by STATIC lane slices of D (no
# (S,H,W)->(H,S,W) transposes anywhere).  Scores never materialized beyond one
# (tq, tkv) block per head; softmax statistics accumulate in f32 VMEM scratch.
# ----------------------------------------------------------------------------
def _attn_kernel(q_ref, k_ref, v_ref, bias_ref, o_ref,
                 m_sc, l_sc, acc_sc, *, n_heads):
    ki = pl.program_id(2)
    n_kv = pl.num_programs(2)
    D = q_ref.shape[-1]
    W = D // n_heads
    tq = q_ref.shape[1]
    tkv = k_ref.shape[1]

    @pl.when(ki == 0)
    def _():
        m_sc[...] = jnp.full_like(m_sc, -jnp.inf)
        l_sc[...] = jnp.zeros_like(l_sc)
        acc_sc[...] = jnp.zeros_like(acc_sc)

    # Hoisted: the (1, tkv) -> (tq, tkv) additive-mask broadcast is emitted
    # once per grid step instead of once per head (no broadcast CSE in JAX).
    bias = jnp.broadcast_to(bias_ref[0], (tq, tkv))

    # Static unrolled loop over heads: static lane slices, no transposes.
    # TODO(synk): for n_heads >= 8 switch to a bounded lax.fori_loop (with
    # pl.ds/pl.multiple_of lane slices) to keep live ranges short at large
    # tq/tkv; and for W < 128 packing 2 heads per score matmul would fill the
    # MXU contraction better.
    for h in range(n_heads):
        sl = slice(h * W, (h + 1) * W)
        qh = q_ref[0, :, sl]                               # (tq,  W) bf16 (pre-scaled)
        kh = k_ref[0, :, sl]                               # (tkv, W) bf16
        vh = v_ref[0, :, sl]                               # (tkv, W) bf16

        # score block: (tq, tkv), bf16 operands, f32 accumulation on the MXU.
        s = lax.dot_general(qh, kh, (((1,), (1,)), ((), ())),
                            preferred_element_type=jnp.float32)
        s = s + bias                                       # mask over key positions

        m_prev = m_sc[h]                                   # (tq, 1) f32
        l_prev = l_sc[h]
        m_new = jnp.maximum(m_prev, jnp.max(s, axis=-1, keepdims=True))
        alpha = jnp.exp(m_prev - m_new)
        # NOTE: on v6e/v7x (bf16 EUP) exp of a bf16 (s - m_new) roughly doubles
        # transcendental throughput; kept in f32 here for v5e and accuracy.
        p = jnp.exp(s - m_new)                             # (tq, tkv) f32
        l_sc[h] = alpha * l_prev + jnp.sum(p, axis=-1, keepdims=True)
        pv = jnp.dot(p.astype(vh.dtype), vh,               # (tq, W) f32 acc
                     preferred_element_type=jnp.float32)
        acc_sc[h] = alpha * acc_sc[h] + pv                 # full-tile store
        m_sc[h] = m_new

    # TODO(synk): nn.Dropout(p_drop_attn) is identity in eval mode; training-mode
    # dropout (pltpu.prng_random_bits based) is not implemented here.

    @pl.when(ki == n_kv - 1)
    def _():
        # Exact reciprocal (runs once per q tile); assemble one lane-dense
        # (tq, D) result and write o_ref with a single unmasked store.
        parts = []
        for h in range(n_heads):
            inv_l = 1.0 / l_sc[h]
            parts.append(acc_sc[h] * inv_l)
        o_ref[0] = jnp.concatenate(parts, axis=-1).astype(o_ref.dtype)


# ----------------------------------------------------------------------------
# Wrapper
# ----------------------------------------------------------------------------
def multi_headed_self_attention(x, mask, params, n_heads, *,
                                compute_dtype=jnp.bfloat16,
                                s_tile=512, q_tile=256, kv_tile=512):
    """x: (B, S, D) f32, mask: (B, S) float. params: dict of W/b, W is (D_in, D_out)."""
    B, S, D = x.shape
    assert D % n_heads == 0
    W = D // n_heads
    out_dtype = x.dtype

    ts = _pick_tile(S, s_tile)
    tq = _pick_tile(S, q_tile)
    tkv = _pick_tile(S, kv_tile)
    # TODO(synk): ragged sequence lengths with no aligned divisor fall back to
    # a single full-length tile; masked edge tiles are not implemented.

    # Fold 1/sqrt(W) into the Q projection; pack Q/K/V into one (D, 3D) matmul.
    scale = 1.0 / math.sqrt(W)
    w_qkv = jnp.concatenate(
        [params["wq"] * scale, params["wk"], params["wv"]], axis=1
    ).astype(compute_dtype)                                       # (D, 3D) bf16
    b_qkv = jnp.concatenate(
        [params["bq"] * scale, params["bk"], params["bv"]], axis=1
    ).astype(jnp.float32)                                         # (1, 3D) f32
    x_c = x.astype(compute_dtype)

    # --- QKV projection ------------------------------------------------------
    # TODO(synk): for large D (>~2k) the (D, 3D) weight block should be tiled
    # over the output (and contraction) dims instead of loaded whole.
    qkv_fp = (2 * ts * _round_up(D, 128) * 2                     # x blocks (bf16, x2)
              + 2 * D * _round_up(3 * D, 128) * 2                # weight block (x2)
              + 8 * _round_up(3 * D, 128) * 4                    # bias
              + 2 * 3 * ts * _round_up(D, 128) * 2)              # q/k/v out blocks
    qkv_params = pltpu.CompilerParams(
        dimension_semantics=("parallel", "parallel"),
        vmem_limit_bytes=_vmem_limit_bytes(qkv_fp))

    q, k, v = pl.pallas_call(
        _qkv_proj_kernel,
        out_shape=tuple(jax.ShapeDtypeStruct((B, S, D), compute_dtype)
                        for _ in range(3)),
        grid_spec=pltpu.PrefetchScalarGridSpec(
            num_scalar_prefetch=0,
            grid=(B, S // ts),
            in_specs=[
                pl.BlockSpec((1, ts, D), lambda b, s: (b, s, 0)),     # x
                pl.BlockSpec((D, 3 * D), lambda b, s: (0, 0)),        # W_qkv
                pl.BlockSpec((1, 3 * D), lambda b, s: (0, 0)),        # b_qkv
            ],
            out_specs=[pl.BlockSpec((1, ts, D), lambda b, s: (b, s, 0))] * 3,
        ),
        compiler_params=qkv_params,
    )(x_c, w_qkv, b_qkv)

    # Additive mask bias computed once (O(B*S) instead of O(B*H*S*S) in-kernel).
    bias = (-10000.0 * (1.0 - mask.astype(jnp.float32))).reshape(B, 1, S)

    # --- Flash-style attention ----------------------------------------------
    out_isz = jnp.dtype(out_dtype).itemsize
    attn_fp = (2 * tq * _round_up(D, 128) * 2                    # q blocks
               + 2 * 2 * tkv * _round_up(D, 128) * 2             # k, v blocks
               + 2 * 8 * _round_up(tkv, 128) * 4                 # bias blocks
               + 2 * tq * _round_up(D, 128) * out_isz            # out blocks
               + 2 * n_heads * _round_up(tq, 8) * 128 * 4        # m / l scratch
               + n_heads * _round_up(tq, 8) * _round_up(W, 128) * 4)  # acc scratch
    attn_params = pltpu.CompilerParams(
        dimension_semantics=("parallel", "parallel", "arbitrary"),
        vmem_limit_bytes=_vmem_limit_bytes(attn_fp))

    out = pl.pallas_call(
        partial(_attn_kernel, n_heads=n_heads),
        out_shape=jax.ShapeDtypeStruct((B, S, D), out_dtype),
        grid_spec=pltpu.PrefetchScalarGridSpec(
            num_scalar_prefetch=0,
            grid=(B, S // tq, S // tkv),
            in_specs=[
                pl.BlockSpec((1, tq, D), lambda b, qi, ki: (b, qi, 0)),   # q
                pl.BlockSpec((1, tkv, D), lambda b, qi, ki: (b, ki, 0)),  # k
                pl.BlockSpec((1, tkv, D), lambda b, qi, ki: (b, ki, 0)),  # v
                pl.BlockSpec((1, 1, tkv), lambda b, qi, ki: (b, 0, ki)),  # mask bias
            ],
            out_specs=pl.BlockSpec((1, tq, D), lambda b, qi, ki: (b, qi, 0)),
            scratch_shapes=[
                pltpu.VMEM((n_heads, tq, 1), jnp.float32),   # running max per head
                pltpu.VMEM((n_heads, tq, 1), jnp.float32),   # running sum per head
                pltpu.VMEM((n_heads, tq, W), jnp.float32),   # output accumulator
            ],
        ),
        compiler_params=attn_params,
    )(q, k, v, bias)
    return out


# ----------------------------------------------------------------------------
# Pure-JAX reference (mirrors the PyTorch forward in eval mode).  MXU matmul
# operands are cast to `compute_dtype` with f32 accumulation — same precision
# contract as the kernel — while the softmax stays in f32.
# ----------------------------------------------------------------------------
def _reference(x, mask, params, n_heads, compute_dtype=jnp.bfloat16):
    B, S, D = x.shape
    W = D // n_heads
    scale = 1.0 / math.sqrt(W)
    xc = x.astype(compute_dtype)

    def proj(w, b, s=1.0):
        y = jnp.dot(xc, (w * s).astype(compute_dtype),
                    preferred_element_type=jnp.float32) + (b * s)
        return y.astype(compute_dtype)

    q = proj(params["wq"], params["bq"], scale)
    k = proj(params["wk"], params["bk"])
    v = proj(params["wv"], params["bv"])

    def heads(t):
        return t.reshape(B, S, n_heads, W).transpose(0, 2, 1, 3)

    qh, kh, vh = heads(q), heads(k), heads(v)
    scores = jnp.einsum('bhqw,bhkw->bhqk', qh, kh,
                        preferred_element_type=jnp.float32)
    scores = scores - 10000.0 * (1.0 - mask.astype(jnp.float32))[:, None, None, :]
    attn = jax.nn.softmax(scores, axis=-1)
    h = jnp.einsum('bhqk,bhkw->bhqw', attn.astype(compute_dtype), vh,
                   preferred_element_type=jnp.float32)
    return h.transpose(0, 2, 1, 3).reshape(B, S, D).astype(x.dtype)


if __name__ == "__main__":
    configs = [
        # (B, S, D, H, tile overrides):
        #  - tiny smoke test,
        #  - lane-aligned config at the large default tiles (single 256 q tile),
        #  - same config with forced 128 tiles to exercise the online-softmax
        #    accumulation across multiple kv blocks.
        (2, 8, 32, 4, {}),
        (2, 256, 256, 2, {}),
        (2, 256, 256, 2, dict(q_tile=128, kv_tile=128)),
    ]
    key = jax.random.PRNGKey(0)
    for (B, S, D, H, tiles) in configs:
        key, kx, km, kq, kk, kv_, kbq, kbk, kbv = jax.random.split(key, 9)
        x = jax.random.normal(kx, (B, S, D), dtype=jnp.float32)
        mask = (jax.random.uniform(km, (B, S)) > 0.3).astype(jnp.float32)

        bound = math.sqrt(6.0 / (D + D))
        params = {
            "wq": jax.random.uniform(kq, (D, D), jnp.float32, -bound, bound),
            "wk": jax.random.uniform(kk, (D, D), jnp.float32, -bound, bound),
            "wv": jax.random.uniform(kv_, (D, D), jnp.float32, -bound, bound),
            "bq": jax.random.uniform(kbq, (1, D), jnp.float32, -0.1, 0.1),
            "bk": jax.random.uniform(kbk, (1, D), jnp.float32, -0.1, 0.1),
            "bv": jax.random.uniform(kbv, (1, D), jnp.float32, -0.1, 0.1),
        }

        out = multi_headed_self_attention(x, mask, params, n_heads=H, **tiles)
        out = jax.block_until_ready(out)

        ref = _reference(x, mask, params, n_heads=H)
        assert out.shape == (B, S, D) and out.dtype == x.dtype
        err = float(jnp.max(jnp.abs(out - ref)))
        # Tolerance covers bf16 quantization-point differences between the
        # online (unnormalized p in bf16) and direct (normalized probs in bf16)
        # softmax paths.
        assert err < 3e-2, f"mismatch (B={B},S={S},D={D},H={H}): max abs err {err}"

    print("KERNEL_OK")
</pallas_src>

<mosaic_0001>
module attributes {stable_mosaic.version = 11 : i64} {
  func.func @_qkv_proj_kernel(%arg0: i32, %arg1: i32, %arg2: memref<1x8x32xbf16, #tpu.memory_space<vmem>>, %arg3: memref<32x96xbf16, #tpu.memory_space<vmem>>, %arg4: memref<1x96xf32, #tpu.memory_space<vmem>>, %arg5: memref<1x8x32xbf16, #tpu.memory_space<vmem>>, %arg6: memref<1x8x32xbf16, #tpu.memory_space<vmem>>, %arg7: memref<1x8x32xbf16, #tpu.memory_space<vmem>>) attributes {dimension_semantics = [#tpu.dimension_semantics<parallel>, #tpu.dimension_semantics<parallel>], iteration_bounds = array<i64: 2, 1>, scalar_prefetch = 0 : i64, scratch_operands = 0 : i64, tpu.core_type = #tpu.core_type<tc>, window_params = [{transform_indices = @transform_0, window_bounds = array<i64: 1, 8, 32>}, {pipeline_mode = #tpu.pipeline_mode<synchronous>, transform_indices = @transform_1, window_bounds = array<i64: 32, 96>}, {pipeline_mode = #tpu.pipeline_mode<synchronous>, transform_indices = @transform_2, window_bounds = array<i64: 1, 96>}, {transform_indices = @transform_3, window_bounds = array<i64: 1, 8, 32>}, {transform_indices = @transform_4, window_bounds = array<i64: 1, 8, 32>}, {transform_indices = @transform_5, window_bounds = array<i64: 1, 8, 32>}]} {
    %c0 = arith.constant 0 : index
    %c0_0 = arith.constant 0 : index
    %c0_1 = arith.constant 0 : index
    %0 = vector.load %arg2[%c0, %c0_0, %c0_1] : memref<1x8x32xbf16, #tpu.memory_space<vmem>>, vector<1x8x32xbf16>
    %1 = vector.shape_cast %0 : vector<1x8x32xbf16> to vector<8x32xbf16>
    %c0_2 = arith.constant 0 : index
    %c0_3 = arith.constant 0 : index
    %2 = vector.load %arg3[%c0_2, %c0_3] : memref<32x96xbf16, #tpu.memory_space<vmem>>, vector<32x96xbf16>
    %cst = arith.constant dense<0.000000e+00> : vector<8x96xf32>
    %3 = tpu.matmul %1, %2, %cst {dimension_numbers = #tpu.dot_dimension_numbers<[1], [0], [0], [1], [0, 0, 1, 1], [], []>} : vector<8x32xbf16>, vector<32x96xbf16>, vector<8x96xf32> -> vector<8x96xf32>
    %c0_4 = arith.constant 0 : index
    %c0_5 = arith.constant 0 : index
    %4 = vector.load %arg4[%c0_4, %c0_5] : memref<1x96xf32, #tpu.memory_space<vmem>>, vector<1x96xf32>
    %5 = vector.broadcast %4 : vector<1x96xf32> to vector<8x96xf32>
    %6 = arith.addf %3, %5 : vector<8x96xf32>
    %7 = vector.extract_strided_slice %6 {offsets = [0, 0], sizes = [8, 32], strides = [1, 1]} : vector<8x96xf32> to vector<8x32xf32>
    %8 = arith.truncf %7 : vector<8x32xf32> to vector<8x32xbf16>
    %c0_6 = arith.constant 0 : index
    %c0_7 = arith.constant 0 : index
    %c0_8 = arith.constant 0 : index
    %9 = vector.load %arg5[%c0_6, %c0_7, %c0_8] : memref<1x8x32xbf16, #tpu.memory_space<vmem>>, vector<1x8x32xbf16>
    %10 = vector.shape_cast %9 : vector<1x8x32xbf16> to vector<8x32xbf16>
    %11 = vector.shape_cast %8 : vector<8x32xbf16> to vector<1x8x32xbf16>
    tpu.vector_store %arg5[%c0_6, %c0_7, %c0_8], %11 {strides = array<i32>} : memref<1x8x32xbf16, #tpu.memory_space<vmem>>, vector<1x8x32xbf16>,
    %12 = vector.extract_strided_slice %6 {offsets = [0, 32], sizes = [8, 32], strides = [1, 1]} : vector<8x96xf32> to vector<8x32xf32>
    %13 = arith.truncf %12 : vector<8x32xf32> to vector<8x32xbf16>
    %c0_9 = arith.constant 0 : index
    %c0_10 = arith.constant 0 : index
    %c0_11 = arith.constant 0 : index
    %14 = vector.load %arg6[%c0_9, %c0_10, %c0_11] : memref<1x8x32xbf16, #tpu.memory_space<vmem>>, vector<1x8x32xbf16>
    %15 = vector.shape_cast %14 : vector<1x8x32xbf16> to vector<8x32xbf16>
    %16 = vector.shape_cast %13 : vector<8x32xbf16> to vector<1x8x32xbf16>
    tpu.vector_store %arg6[%c0_9, %c0_10, %c0_11], %16 {strides = array<i32>} : memref<1x8x32xbf16, #tpu.memory_space<vmem>>, vector<1x8x32xbf16>,
    %17 = vector.extract_strided_slice %6 {offsets = [0, 64], sizes = [8, 32], strides = [1, 1]} : vector<8x96xf32> to vector<8x32xf32>
    %18 = arith.truncf %17 : vector<8x32xf32> to vector<8x32xbf16>
    %c0_12 = arith.constant 0 : index
    %c0_13 = arith.constant 0 : index
    %c0_14 = arith.constant 0 : index
    %19 = vector.load %arg7[%c0_12, %c0_13, %c0_14] : memref<1x8x32xbf16, #tpu.memory_space<vmem>>, vector<1x8x32xbf16>
    %20 = vector.shape_cast %19 : vector<1x8x32xbf16> to vector<8x32xbf16>
    %21 = vector.shape_cast %18 : vector<8x32xbf16> to vector<1x8x32xbf16>
    tpu.vector_store %arg7[%c0_12, %c0_13, %c0_14], %21 {strides = array<i32>} : memref<1x8x32xbf16, #tpu.memory_space<vmem>>, vector<1x8x32xbf16>,
    return
  }
  func.func @transform_0(%arg0: i32, %arg1: i32) -> (i32, i32, i32) {
    %c0_i32 = arith.constant 0 : i32
    %c0_i32_0 = arith.constant 0 : i32
    return %arg0, %arg1, %c0_i32 : i32, i32, i32
  }
  func.func @transform_1(%arg0: i32, %arg1: i32) -> (i32, i32) {
    %c0_i32 = arith.constant 0 : i32
    %c0_i32_0 = arith.constant 0 : i32
    %c0_i32_1 = arith.constant 0 : i32
    return %c0_i32, %c0_i32_0 : i32, i32
  }
  func.func @transform_2(%arg0: i32, %arg1: i32) -> (i32, i32) {
    %c0_i32 = arith.constant 0 : i32
    %c0_i32_0 = arith.constant 0 : i32
    %c0_i32_1 = arith.constant 0 : i32
    return %c0_i32, %c0_i32_0 : i32, i32
  }
  func.func @transform_3(%arg0: i32, %arg1: i32) -> (i32, i32, i32) {
    %c0_i32 = arith.constant 0 : i32
    %c0_i32_0 = arith.constant 0 : i32
    return %arg0, %arg1, %c0_i32 : i32, i32, i32
  }
  func.func @transform_4(%arg0: i32, %arg1: i32) -> (i32, i32, i32) {
    %c0_i32 = arith.constant 0 : i32
    %c0_i32_0 = arith.constant 0 : i32
    return %arg0, %arg1, %c0_i32 : i32, i32, i32
  }
  func.func @transform_5(%arg0: i32, %arg1: i32) -> (i32, i32, i32) {
    %c0_i32 = arith.constant 0 : i32
    %c0_i32_0 = arith.constant 0 : i32
    return %arg0, %arg1, %c0_i32 : i32, i32, i32
  }
}

</mosaic_0001>

<bundles_post_ra>
// kernel: tpu_custom_call.1
= control target key start
LH: loop header
LB: loop body
LE: loop exit
PB: predicated region body
PF: predicated region fallthrough
CT: control target
= control target key end

     0   :  { %s1119_s0 = inlined_call_operand.hbm [shape: bf16[2,8,32], index: 0, kind: input, shape index: {}]   ;;  %s1120_s1 = inlined_call_operand.hbm [shape: bf16[32,96], index: 1, kind: input, shape index: {}]   ;;  %s1121_s2 = inlined_call_operand.vmem [shape: f32[1,96], index: 2, kind: input, shape index: {}]   ;;  %s1122_s3 = inlined_call_operand.hbm [shape: bf16[2,8,32], index: 3, kind: output, shape index: {0}]   ;;  %s1123_s4 = inlined_call_operand.hbm [shape: bf16[2,8,32], index: 4, kind: output, shape index: {1}]   ;;  %s1124_s5 = inlined_call_operand.hbm [shape: bf16[2,8,32], index: 5, kind: output, shape index: {2}]  }
   0x1   :  { %1126 = sst [smem:[#allocation15_spill]] %s1119_s0 }
   0x2   :  { %11 = vsyncpa [#allocation3], 0 }
   0x3   :  { %13 = vsyncpa [#allocation3 + $0x1], 0 }
   0x4   :  { %14 = vsyncpa [#allocation6], 0 }
   0x5   :  { %15 = vsyncpa [#allocation4], 0 }
   0x6   :  { %17 = vsyncpa [#allocation4 + $0x1], 0 }
   0x7   :  { %18 = vsyncpa [#allocation9], 0 }
   0x8   :  { %20 = vsyncpa [#allocation9 + $0x1], 0  ;;  %s924_s18 = smov 0   ;;  %s926_s19 = smov 0  }
   0x9   :  { %s928_s20 = smov 0   ;;  %s930_s21 = smov 0  }
   0xa   :  { %s932_s22 = smov 0   ;;  %s934_s23 = smov 0  }
   0xb LB: > { %s955_s24 = sadd.s32 4294967295, %s887_s23   ;;  %p563_p0 = scmp.ge.s32.totalorder %s887_s23, 1  ;;  %s887_s23 = sphi %s934_s23, %s26_s23   ;;  %s883_s22 = sphi %s932_s22, %s1138_s22   ;;  %s879_s21 = sphi %s930_s21, %s1137_s21   ;;  %s875_s20 = sphi %s928_s20, %s1136_s20   ;;  %s871_s19 = sphi %s926_s19, %s1135_s19   ;;  %s867_s18 = sphi %s924_s18, %s1134_s18  }
   0xc   : > { %p61_p1 = scmp.eq.s32.totalorder %s955_s24, 0  ;;  %p197_p2 = scmp.lt.s32.totalorder %s887_s23, 3 }
   0xd   : > { %s208_s27 = sshll.u32 %s1120_s1, 4  ;;  %s889_s29 = smov [#allocation5]   ;;  %s209_s27 = int_to_ptr.hbm [resolvable:$true] %s208_s27 }
   0xe   : > { %p963_p3 = pnand %p563_p0, %p197_p2  ;;  %s210_s30 = sshll.u32 %s889_s29, 4  ;;  %s211_s30 = int_to_ptr.vmem [resolvable:$true] %s210_s30 }
   0xf   : > { %p565_p6 = scmp.ge.s32.totalorder %s887_s23, 2  ;;  %s890_s6 = smov 64  }
  0x10   : > { %p605_p4 = pneg %p963_p3  ;;  %s891_s7 = smov 4  }
  0x11   : > { %s1125_s8 = sadd.s32 4294967294, %s887_s23   ;;  %s38_s9 = sadd.s32 1, %s883_s22 }
  0x12   : > { %p606_p5 = pnand %p605_p4, %p61_p1  ;;  %s47_s10 = sadd.s32 1, %s875_s20 }
  0x13   : > { %p40_p7 = scmp.ge.s32.totalorder %s38_s9, 2  ;;  %p54_p8 = scmp.ne.s32.totalorder %s875_s20, %s871_s19 }
  0x14   : > { %608 = dma.hbm_to_vmem [thread:$0]  (!%p606_p5), %s209_s27, 256, %s211_s30, [#allocation6], %s890_s6, %s890_s6, %s891_s7  }
  0x15   : > { %p55_p9 = scmp.eq.s32.totalorder %s887_s23, 0  ;;  %p60_p10 = scmp.ne.s32.totalorder %s871_s19, %s867_s18 }
  0x16   : > { %s1140_s9 = smov (%p40_p7, %s38_s9), 0  ;;  %p128_p13 = scmp.eq.s32.totalorder %s955_s24, 1 }
  0x17   : > { %p982_p11 = por %p55_p9, %p54_p8  ;;  %p988_p12 = por %p61_p1, %p60_p10 }
  0x18   : > { %s42_s13 = ssub.s32 %s883_s22, %s1140_s9  ;;  %p134_p2 = scmp.eq.s32.totalorder %s1125_s8, 1 }
  0x19   : > { %p45_p0 = scmp.eq.s32.totalorder %s42_s13, 0  ;;  %p997_p4 = por %p128_p13, %p54_p8 }
  0x1a   : > { %p624_p5 = scmp.lt.s32.totalorder %s887_s23, 2  ;;  %p1005_p7 = por %p134_p2, %p60_p10 }
  0x1b   : > { %s1003_s15 = scalar_select %p45_p0, %s875_s20, %s47_s10  }
  0x1c   : > { %s227_s17 = sand.u32 1, %s875_s20   ;;  %s567_s26 = sshll.u32 %s883_s22, 2 }
  0x1d   : > { %s566_s25 = sshll.u32 %s227_s17, 2  ;;  %s1132_s0 = sld [smem:[#allocation15_spill]] }
  0x1e   : > { %s231_s6 = scalar_lea.vmem [#allocation2], %s566_s25  ;;  %p610_p8 = pnand %p624_p5, %p982_p11 }
  0x1f   : > { %s240_s7 = sshll.u32 %s231_s6, 4  ;;  %s228_s10 = scalar_lea.sflag [#allocation3], %s227_s17  ;;  %s241_s7 = int_to_ptr.vmem [resolvable:$true] %s240_s7 }
  0x20   : > { %s1019_s8 = sand.u32 (!%p963_p3), 1, %s871_s19  }
  0x21   : > { %249 = sbr.rel (%p963_p3) target bundleno = 310 (0x136), region = 32  ;;  %s1022_s27 = sshll.u32 (!%p963_p3), %s1019_s8, 2 }
  0x22   : > { %s252_s25 = scalar_lea.sflag (!%p963_p3), [#allocation3], %s1019_s8 }
  0x23   : > { %s236_s30 = scalar_lea.hbm %s1132_s0, %s567_s26  ;;  %s255_s26 = scalar_lea.vmem (!%p963_p3), [#allocation2], %s1022_s27 }
  0x24   : > { %s238_s13 = sshll.u32 %s236_s30, 4  ;;  %s239_s13 = int_to_ptr.hbm [resolvable:$true] %s238_s13 }
  0x25   : > { %612 = dma.hbm_to_vmem [thread:$0]  (!%p610_p8), %s239_s13, 64, %s241_s7, %s228_s10  }
  0x26   : > { %850 = dma.done.wait (%p988_p12), %s252_s25, 64  }
  0x27   : > { %852 = vsyncadd (%p988_p12), %s252_s25, 4294967232 }
  0x28   : > { %854 = dma.done.wait (%p61_p1), [#allocation6], 256  }
  0x29   : > { %856 = vsyncadd (%p61_p1), [#allocation6], 4294967040  ;;  %v592_v0 = vld [vmem:[#allocation5 + $0x8] sm:$0xff]  ;;  %v591_v1 = vld [vmem:[#allocation5] sm:$0xff]  ;;  %vm320_vm0 = vcmask 261120   ;;  %s1038_s12 = sshll.u32 %s879_s21, 2 }
  0x2a   : > { %330 = vmatpush.bf16.msra.mxu0 %v592_v0  ;;  %v299_v2 = vld [vmem:[%s255_s26] sm:$0xf]  ;;  %s371_s30 = scalar_lea.hbm %s1122_s3, %s1038_s12  ;;  %vm338_vm1 = vcmask 257024   ;;  %s283_s6 = scalar_lea.vmem [#allocation7], %s1022_s27 }
  0x2b   : > { %v680_v3 = vld [vmem:[%s1121_s2] ss:$0 sm:$0xff]  ;;  %s373_s7 = sshll.u32 %s283_s6, 4  ;;  %s375_s13 = sshll.u32 %s371_s30, 4  ;;  %s374_s7 = int_to_ptr.vmem [resolvable:$true] %s373_s7  ;;  %s376_s13 = int_to_ptr.hbm [resolvable:$true] %s375_s13 }
  0x2c   : > { %s892_s10 = smov 96   ;;  %s350_s21 = scalar_lea.sflag [#allocation4], %s1019_s8 }
  0x2d   : > { %s755_s25 = sshra.s32 %s376_s13, 4  ;;  %s761_s17 = scalar_lea.hbm %s1122_s3, 8  ;;  %s756_s25 = int_to_ptr.hbm [resolvable:$true] %s755_s25 }
  0x2e   : > { %331 = vmatpush.bf16.msra.mxu0 %v591_v1  ;;  %s757_s26 = scalar_lea.hbm %s756_s25, 4  ;;  %p762_p10 = scmp.lt.s32.totalorder %s756_s25, %s1122_s3 }
  0x2f   : > { %p758_p1 = scmp.ne.s32.totalorder %s756_s25, %s757_s26  ;;  %p763_p11 = scmp.lt.s32.totalorder %s761_s17, %s757_s26 }
  0x31   : > { %582 = vmatmul.msk.bf16.vlgmr.msra.gmra.mxu0 %vm320_vm0, %v299_v2  ;;  %p759_p3 = pnand %p758_p1, %p997_p4  ;;  %p764_p12 = por %p763_p11, %p762_p10 }
  0x33   : > { %p760_p9 = pneg %p759_p3 }
  0x35   : > { %p765_p13 = pnand %p764_p12, %p760_p9 }
  0xae   : > { %v333_v4 = vpop.f32.mrf.mxu0 }
  0xaf   : > { %v334_v5 = vadd.f32 %v680_v3, %v333_v4 }
  0xb1   : > { %v337_v6 = vpack.c.bf16 %v334_v5, %v334_v5 }
  0xb3   : > { %341 = vrot.lane.b32.xlu0 %v337_v6, %s892_s10  ;;  %339 = vst.msk [vmem:[%s283_s6] sm:$0xf] %vm338_vm1, %v337_v6 }
  0xb4   : > { %768 = shalt.err (!%p765_p13)
}
  0xb5   : > { %599 = dma.vmem_to_hbm [thread:$0]  (%p997_p4), %s374_s7, 64, %s376_s13, %s350_s21  }
  0xb6   : > { %v335_v7 = vpop.f32.mrf.mxu0  ;;  %s893_s8 = smov 64   ;;  %s386_s28 = scalar_lea.hbm %s1123_s4, %s1038_s12 }
  0xb7   : > { %s354_s25 = sand.u32 1, %s955_s24   ;;  %s290_s26 = scalar_lea.vmem [#allocation8], %s1022_s27 }
  0xb8   : > { %s388_s11 = sshll.u32 %s290_s26, 4  ;;  %s390_s17 = sshll.u32 %s386_s28, 4  ;;  %s389_s11 = int_to_ptr.vmem [resolvable:$true] %s388_s11  ;;  %s391_s17 = int_to_ptr.hbm [resolvable:$true] %s390_s17 }
  0xb9   : > { %s401_s7 = scalar_lea.hbm %s1124_s5, %s1038_s12  ;;  %s1068_s13 = scalar_lea.sflag [#allocation9], %s354_s25 }
  0xba   : > { %s783_s21 = sshra.s32 %s391_s17, 4  ;;  %s789_s10 = scalar_lea.hbm %s1123_s4, 8  ;;  %s784_s21 = int_to_ptr.hbm [resolvable:$true] %s783_s21 }
  0xbb   : > { %345 = vrot.lane.b32.xlu0 %v337_v6, %s893_s8  ;;  %s785_s8 = scalar_lea.hbm %s784_s21, 4  ;;  %p790_p8 = scmp.lt.s32.totalorder %s784_s21, %s1123_s4 }
  0xbc   : > { %p786_p0 = scmp.ne.s32.totalorder %s784_s21, %s785_s8  ;;  %p791_p1 = scmp.lt.s32.totalorder %s789_s10, %s785_s8 }
  0xbe   : > { %p787_p2 = pnand %p786_p0, %p997_p4  ;;  %p792_p3 = por %p791_p1, %p790_p8 }
  0xc0   : > { %p788_p5 = pneg %p787_p2 }
  0xc2   : > { %p793_p9 = pnand %p792_p3, %p788_p5 }
 0x125   : > { %v342_v8 = vpop.permute.xlu0 %341 }
 0x126   : > { %344 = vst.msk [vmem:[%s290_s26] sm:$0xf] %vm338_vm1, %v342_v8 }
 0x127   : > { %796 = shalt.err (!%p793_p9)
}
 0x128   : > { %600 = dma.vmem_to_hbm [thread:$0]  (%p997_p4), %s389_s11, 64, %s391_s17, %s1068_s13  }
 0x129   : > { %s297_s12 = scalar_lea.vmem [#allocation10], %s1022_s27  ;;  %s405_s26 = sshll.u32 %s401_s7, 4  ;;  %s406_s26 = int_to_ptr.hbm [resolvable:$true] %s405_s26 }
 0x12a   : > { %s403_s25 = sshll.u32 %s297_s12, 4  ;;  %s811_s0 = sshra.s32 %s406_s26, 4  ;;  %s404_s25 = int_to_ptr.vmem [resolvable:$true] %s403_s25  ;;  %s812_s0 = int_to_ptr.hbm [resolvable:$true] %s811_s0 }
 0x12b   : > { %s813_s29 = scalar_lea.hbm %s812_s0, 4  ;;  %s817_s8 = scalar_lea.hbm %s1124_s5, 8 }
 0x12c   : > { %p814_p10 = scmp.ne.s32.totalorder %s812_s0, %s813_s29  ;;  %p818_p13 = scmp.lt.s32.totalorder %s812_s0, %s1124_s5 }
 0x12d   : > { %v346_v9 = vpop.permute.xlu0 %345  ;;  %p819_p0 = scmp.lt.s32.totalorder %s817_s8, %s813_s29 }
 0x12e   : > { %348 = vst.msk [vmem:[%s297_s12] sm:$0xf] %vm338_vm1, %v346_v9  ;;  %p815_p11 = pnand %p814_p10, %p997_p4 }
 0x12f   : > { %p820_p2 = por %p819_p0, %p818_p13 }
 0x130   : > { %p816_p12 = pneg %p815_p11 }
 0x132   : > { %p821_p5 = pnand %p820_p2, %p816_p12 }
 0x134   : > { %824 = shalt.err (!%p821_p5)
}
 0x135   : > { %601 = dma.vmem_to_hbm [thread:$0]  (%p997_p4), %s404_s25, 64, %s406_s26, %s1068_s13  }
 0x136 PF: > { %s417_s17 = sand.u32 1, %s867_s18   ;;  %p614_p8 = pnand %p565_p6, %p1005_p7 }
 0x137   : > { %s418_s7 = scalar_lea.sflag [#allocation4], %s417_s17 }
 0x138   : > { %p615_p1 = pneg %p614_p8 }
 0x13a   : > { %858 = dma.done.wait (%p615_p1), %s418_s7, 64  }
 0x13b   : > { %860 = vsyncadd (%p615_p1), %s418_s7, 4294967232  ;;  %s1133_s24 = sadd.s32 4294967294, %s887_s23  }
 0x13c   : > { %s427_s6 = sand.u32 1, %s1133_s24  }
 0x13d   : > { %s428_s10 = scalar_lea.sflag [#allocation9], %s427_s6 }
 0x13e   : > { %862 = dma.done.wait (%p615_p1), %s428_s10, 128  }
 0x13f   : > { %864 = vsyncadd (%p615_p1), %s428_s10, 4294967168  ;;  %s26_s23 = sadd.s32 1, %s887_s23   ;;  %s1134_s18 = smov %s871_s19 }
 0x140   : > { %p23_p4 = scmp.ge.s32.totalorder %s26_s23, 4   ;;  %s1135_s19 = smov %s875_s20 }
 0x141   : > { %s1136_s20 = smov %s1003_s15  ;;  %s1137_s21 = smov %s883_s22 }
 0x142   : > { %s1138_s22 = smov %s1140_s9  ;;  %25 = sbr.rel (!%p23_p4) target bundleno = 11 (0xb), region = 113 }
 0x147   :  { %444 = vsyncpa [#allocation3], 1 }
 0x148   :  { %446 = vsyncpa [#allocation3 + $0x1], 1 }
 0x149   :  { %447 = vsyncpa [#allocation6], 1 }
 0x14a   :  { %448 = vsyncpa [#allocation4], 1 }
 0x14b   :  { %450 = vsyncpa [#allocation4 + $0x1], 1 }
 0x14c   :  { %451 = vsyncpa [#allocation9], 1 }
 0x14d   :  { %453 = vsyncpa [#allocation9 + $0x1], 1 }

</bundles_post_ra>
